<compile_context>
chip_gen: v5e
topology: v5e:2x2
jax: 0.10.0
libtpu: 0.0.40
codegen_flags: <defaults>
</compile_context>

<pallas_src>
import jax
import jax.numpy as jnp
from jax.experimental import pallas as pl
from jax.experimental.pallas import tpu as pltpu

_POW_EPS = 1e-9                  # epsilon added before pow (matches the module)
_LANES = 128                     # TPU lane width
_TARGET_ROWS_PER_BLOCK = 2048    # 2048 rows * 128 lanes * 4 B = 1 MiB / f32 block


def _highlight_kernel(x_ref, img_ref, out_ref):
    # Per-batch exponent, shape (B_TILE, 1, 1); broadcasts over the image block.
    e = x_ref[...].astype(jnp.float32) + 1.0            # exponent in [0, 2]

    # Force f32 compute regardless of the I/O dtype.
    img = img_ref[...].astype(jnp.float32)               # (B_TILE, ROW_TILE, 128)

    base = (1.0 - img) + _POW_EPS                         # invert; base in (0, 1+eps]
    # pow(base, e) == exp2(e * log2(base)) for base > 0; log2/exp2 hit the EUP slot.
    pw = jnp.exp2(e * jnp.log2(base))
    pw = jnp.minimum(pw, 1.0)                             # exp2 >= 0, lower clamp dead
    out_ref[...] = (1.0 - pw).astype(out_ref.dtype)       # (1 - pw) already in [0, 1]


def _pick_tiles(n, rows):
    """Choose (B_TILE, ROW_TILE) so each block is ~1 MiB of f32."""
    if rows >= _TARGET_ROWS_PER_BLOCK:
        return 1, _TARGET_ROWS_PER_BLOCK                  # multiple of 8 -> legal tile
    # Small images: span several batch items per block; full-extent row dim is
    # always a legal block size even when `rows` is not a multiple of 8.
    b_tile = min(n, max(1, _TARGET_ROWS_PER_BLOCK // rows))
    return b_tile, rows


def highlight_filter(image, x):
    """image: [n, 3, H, W] in [0, 1]; x: [n, 1, 1, 1] in [-1, 1]."""
    n, c, hh, ww = image.shape
    assert c == 3
    total = c * hh * ww
    rows = pl.cdiv(total, _LANES)
    padded = rows * _LANES

    img_flat = image.reshape(n, total)
    if padded != total:
        # Zero padding keeps base = 1 + eps in the pad lanes (no NaNs); the pad
        # is sliced off after the kernel.
        img_flat = jnp.pad(img_flat, ((0, 0), (0, padded - total)))
    img_rows = img_flat.reshape(n, rows, _LANES)          # fully lane/sublane dense

    xs = x.reshape(n, 1, 1).astype(jnp.float32)           # tiny per-batch exponent input

    b_tile, row_tile = _pick_tiles(n, rows)
    grid = (pl.cdiv(n, b_tile), pl.cdiv(rows, row_tile))

    itemsize = jnp.dtype(image.dtype).itemsize
    cost = pl.CostEstimate(
        flops=5 * n * total,
        transcendentals=2 * n * total,
        bytes_accessed=2 * n * total * itemsize + n * 4,
    )

    out_rows = pl.pallas_call(
        _highlight_kernel,
        out_shape=jax.ShapeDtypeStruct((n, rows, _LANES), image.dtype),
        grid=grid,
        in_specs=[
            pl.BlockSpec((b_tile, 1, 1), lambda b, r: (b, 0, 0)),            # x
            pl.BlockSpec((b_tile, row_tile, _LANES), lambda b, r: (b, r, 0)),  # image
        ],
        out_specs=pl.BlockSpec((b_tile, row_tile, _LANES), lambda b, r: (b, r, 0)),
        compiler_params=pltpu.CompilerParams(
            dimension_semantics=("parallel", "parallel"),
            vmem_limit_bytes=32 * 1024 * 1024,
        ),
        cost_estimate=cost,
    )(xs, img_rows)

    out_flat = out_rows.reshape(n, padded)
    if padded != total:
        out_flat = out_flat[:, :total]
    return out_flat.reshape(n, 3, hh, ww)


if __name__ == "__main__":
    key = jax.random.PRNGKey(0)
    k_img, k_x = jax.random.split(key)
    n, hh, ww = 2, 16, 16
    image = jax.random.uniform(k_img, (n, 3, hh, ww), dtype=jnp.float32)        # [0, 1)
    x = jax.random.uniform(k_x, (n, 1, 1, 1), dtype=jnp.float32) * 2.0 - 1.0    # [-1, 1]

    out = highlight_filter(image, x)
    jax.block_until_ready(out)

    # Pure-JAX reference of the HighlightFilter forward pass.
    def _ref(image, x):
        e = x + 1.0                                       # (n,1,1,1) broadcast
        inv = 1.0 - image                                 # kornia invert, max_val = 1
        pw = jnp.clip(jnp.power(inv + _POW_EPS, e), 0.0, 1.0)
        return jnp.clip(1.0 - pw, 0.0, 1.0)

    ref = _ref(image, x)
    assert out.shape == image.shape
    assert jnp.allclose(out, ref, atol=1e-5), "mismatch vs reference"
    print("KERNEL_OK")
</pallas_src>

<mosaic_0001>
module attributes {stable_mosaic.version = 11 : i64} {
  func.func @_highlight_kernel(%arg0: i32, %arg1: i32, %arg2: memref<2x1x1xf32, #tpu.memory_space<vmem>>, %arg3: memref<2x6x128xf32, #tpu.memory_space<vmem>>, %arg4: memref<2x6x128xf32, #tpu.memory_space<vmem>>) attributes {dimension_semantics = [#tpu.dimension_semantics<parallel>, #tpu.dimension_semantics<parallel>], iteration_bounds = array<i64: 1, 1>, scalar_prefetch = 0 : i64, scratch_operands = 0 : i64, tpu.core_type = #tpu.core_type<tc>, window_params = [{transform_indices = @transform_0, window_bounds = array<i64: 2, 1, 1>}, {transform_indices = @transform_1, window_bounds = array<i64: 2, 6, 128>}, {transform_indices = @transform_2, window_bounds = array<i64: 2, 6, 128>}]} {
    %c0 = arith.constant 0 : index
    %c0_0 = arith.constant 0 : index
    %c0_1 = arith.constant 0 : index
    %0 = vector.load %arg2[%c0, %c0_0, %c0_1] : memref<2x1x1xf32, #tpu.memory_space<vmem>>, vector<2x1x1xf32>
    %cst = arith.constant 1.000000e+00 : f32
    %1 = vector.broadcast %cst : f32 to vector<2x1x1xf32>
    %2 = arith.addf %0, %1 : vector<2x1x1xf32>
    %c0_2 = arith.constant 0 : index
    %c0_3 = arith.constant 0 : index
    %c0_4 = arith.constant 0 : index
    %3 = vector.load %arg3[%c0_2, %c0_3, %c0_4] : memref<2x6x128xf32, #tpu.memory_space<vmem>>, vector<2x6x128xf32>
    %cst_5 = arith.constant 1.000000e+00 : f32
    %4 = vector.broadcast %cst_5 : f32 to vector<2x6x128xf32>
    %5 = arith.subf %4, %3 : vector<2x6x128xf32>
    %cst_6 = arith.constant 9.99999971E-10 : f32
    %6 = vector.broadcast %cst_6 : f32 to vector<2x6x128xf32>
    %7 = arith.addf %5, %6 : vector<2x6x128xf32>
    %8 = math.log %7 : vector<2x6x128xf32>
    %cst_7 = arith.constant 2.000000e+00 : f32
    %9 = math.log %cst_7 : f32
    %10 = vector.broadcast %9 : f32 to vector<2x6x128xf32>
    %11 = arith.divf %8, %10 : vector<2x6x128xf32>
    %12 = vector.broadcast %2 : vector<2x1x1xf32> to vector<2x6x128xf32>
    %13 = arith.mulf %12, %11 : vector<2x6x128xf32>
    %14 = math.exp2 %13 : vector<2x6x128xf32>
    %cst_8 = arith.constant 1.000000e+00 : f32
    %15 = vector.broadcast %cst_8 : f32 to vector<2x6x128xf32>
    %16 = arith.minimumf %14, %15 : vector<2x6x128xf32>
    %cst_9 = arith.constant 1.000000e+00 : f32
    %17 = vector.broadcast %cst_9 : f32 to vector<2x6x128xf32>
    %18 = arith.subf %17, %16 : vector<2x6x128xf32>
    %c0_10 = arith.constant 0 : index
    %c0_11 = arith.constant 0 : index
    %c0_12 = arith.constant 0 : index
    %19 = vector.load %arg4[%c0_10, %c0_11, %c0_12] : memref<2x6x128xf32, #tpu.memory_space<vmem>>, vector<2x6x128xf32>
    tpu.vector_store %arg4[%c0_10, %c0_11, %c0_12], %18 {strides = array<i32>} : memref<2x6x128xf32, #tpu.memory_space<vmem>>, vector<2x6x128xf32>,
    return
  }
  func.func @transform_0(%arg0: i32, %arg1: i32) -> (i32, i32, i32) {
    %c0_i32 = arith.constant 0 : i32
    %c0_i32_0 = arith.constant 0 : i32
    %c0_i32_1 = arith.constant 0 : i32
    return %arg0, %c0_i32, %c0_i32_0 : i32, i32, i32
  }
  func.func @transform_1(%arg0: i32, %arg1: i32) -> (i32, i32, i32) {
    %c0_i32 = arith.constant 0 : i32
    %c0_i32_0 = arith.constant 0 : i32
    return %arg0, %arg1, %c0_i32 : i32, i32, i32
  }
  func.func @transform_2(%arg0: i32, %arg1: i32) -> (i32, i32, i32) {
    %c0_i32 = arith.constant 0 : i32
    %c0_i32_0 = arith.constant 0 : i32
    return %arg0, %arg1, %c0_i32 : i32, i32, i32
  }
}

</mosaic_0001>

<bundles_post_ra>
// kernel: tpu_custom_call.1
= control target key start
LH: loop header
LB: loop body
LE: loop exit
PB: predicated region body
PF: predicated region fallthrough
CT: control target
= control target key end

     0   :  { %v73_v0 = vmov 0   ;;  %v74_v7 = vmov 0.6931472   ;;  %s108_s0 = inlined_call_operand.vmem [shape: f32[2,1,1], index: 0, kind: input, shape index: {}]   ;;  %s109_s1 = inlined_call_operand.vmem [shape: f32[2,6,128], index: 1, kind: input, shape index: {}]   ;;  %s110_s2 = inlined_call_operand.vmem [shape: f32[2,6,128], index: 2, kind: output, shape index: {}]  }
   0x1   :  { %62 = vset.pattern.permute.xlu0 %v73_v0  ;;  %v11_v1 = vld [vmem:[%s108_s0] sm:$0x1]  ;;  %v12_v3 = vld [vmem:[%s108_s0 + $0x1] sm:$0x1]  ;;  %63 = vrcp.f32 %v74_v7  ;;  %v16_v13 = vld [vmem:[%s109_s1 + $0x8] sm:$0x3f] }
   0x2   :  { %v13_v2 = vadd.f32 1.0, %v11_v1  ;;  %v14_v5 = vadd.f32 1.0, %v12_v3  ;;  %v15_v8 = vld [vmem:[%s109_s1] sm:$0x3f]  ;;  %v18_v15 = vsub.f32 1.0, %v16_v13 }
   0x3   :  { %v17_v10 = vsub.f32 1.0, %v15_v8 }
   0x4   :  { %v36_v4 = vperm.slane %v13_v2, 0  ;;  %v37_v6 = vperm.slane %v14_v5, 0  ;;  %v20_v17 = vadd.f32 1e-09, %v18_v15 }
   0x5   :  { %v19_v12 = vadd.f32 1e-09, %v17_v10 }
   0x6   :  { %39 = vperm.xlu0 %62, %v36_v4  }
   0x7   :  { %v64_v9 = vpop.eup %63  ;;  %65 = vlog2.f32 %v19_v12 }
   0x8   :  { %v26_v11 = vmul.f32 0.6931472, %v64_v9  ;;  %vm30_vm0 = vweird.f32 %v64_v9  ;;  %67 = vlog2.f32 %v20_v17 }
   0xa   :  { %v27_v14 = vsub.f32 1.0, %v26_v11 }
   0xc   :  { %v28_v16 = vmul.f32 %v64_v9, %v27_v14 }
   0xd   :  { %v66_v18 = vpop.eup %65 }
   0xe   :  { %43 = vperm.xlu0 %62, %v37_v6   ;;  %v29_v19 = vadd.f32 %v64_v9, %v28_v16  ;;  %v22_v20 = vmul.f32 0.6931472, %v66_v18  ;;  %v68_v23 = vpop.eup %67 }
   0xf   :  { %v24_v26 = vmul.f32 0.6931472, %v68_v23 }
  0x10   :  { %v31_v21 = vsel %vm30_vm0, %v64_v9, %v29_v19 }
  0x11   :  { %v32_v22 = vmul.f32 %v31_v21, %v22_v20  ;;  %v33_v27 = vmul.f32 %v31_v21, %v24_v26 }
  0x78   :  { %v40_v24 = vpop.permute.xlu0 %39 }
  0x79   :  { %v46_v25 = vmul.f32 %v40_v24, %v32_v22 }
  0x7b   :  { %69 = vpow2.f32 %v46_v25 }
  0x80   :  { %v44_v28 = vpop.permute.xlu0 %43 }
  0x81   :  { %v70_v29 = vpop.eup %69  ;;  %v47_v30 = vmul.f32 %v44_v28, %v33_v27 }
  0x82   :  { %v50_v31 = vmin.f32 %v70_v29, 1.0 }
  0x83   :  { %71 = vpow2.f32 %v47_v30 }
  0x84   :  { %v52_v32 = vsub.f32 1.0, %v50_v31 }
  0x86   :  { %54 = vst [vmem:[%s110_s2] sm:$0x3f] %v52_v32 }
  0x89   :  { %v72_v33 = vpop.eup %71 }
  0x8a   :  { %v51_v34 = vmin.f32 %v72_v33, 1.0 }
  0x8c   :  { %v53_v35 = vsub.f32 1.0, %v51_v34 }
  0x8e   :  { %55 = vst [vmem:[%s110_s2 + $0x8] sm:$0x3f] %v53_v35 }

</bundles_post_ra>
